<compile_context>
chip_gen: v7x
topology: tpu7x:2x2x1
jax: 0.10.0
libtpu: 0.0.40
codegen_flags: <defaults>
</compile_context>

<pallas_src>
import functools

import jax
import jax.numpy as jnp
from jax.experimental import pallas as pl
from jax.experimental.pallas import tpu as pltpu


def ncf_kernel(emb_ref, w1_ref, b1_ref, w2f_ref, wg_ref, bf_ref, out_ref,
               *, embed_size, user_field_idx, item_field_idx):
    E = embed_size
    emb = emb_ref[...]                                       # [TB, F*E] bf16

    # MLP layer 1 on the MXU: [TB, FE] @ [FE, H1] -> [TB, H1], f32 accumulate.
    h = jnp.dot(emb, w1_ref[...], preferred_element_type=jnp.float32)
    h = jnp.maximum(h + b1_ref[...], 0.0)                    # [TB, H1] f32

    # GMF branch from static lane slices of the embedding tile.  Cast to f32
    # before the multiply so no bf16 VPU op is emitted (v5e has none).
    u0 = user_field_idx * E
    i0 = item_field_idx * E
    gmf = (emb[:, u0:u0 + E].astype(jnp.float32)
           * emb[:, i0:i0 + E].astype(jnp.float32))          # [TB, E] f32

    # Folded second MLP layer + final fc (valid: no activation after layer 2,
    # dropout = 0):
    #   logit = h @ (W2 @ wfc_m) + gmf @ wfc_g + (b2 @ wfc_m + bfc)
    logit = (jnp.sum(h * w2f_ref[...], axis=-1, keepdims=True)
             + jnp.sum(gmf * wg_ref[...], axis=-1, keepdims=True)
             + bf_ref[...])                                  # [TB, 1]

    out_ref[...] = jax.nn.sigmoid(logit)


def _field_offsets(feature_dims):
    offs = [0]
    for d in feature_dims[:-1]:
        offs.append(offs[-1] + int(d))
    return jnp.asarray(offs, dtype=jnp.int32)


def _round_up(x, m):
    return ((x + m - 1) // m) * m


def _pick_batch_tile(batch, target=8192, min_steps=4):
    """Large lane-friendly batch tile (4K-16K range per review), clamped so the
    grid keeps >= min_steps steps when the batch allows it (v7x dual-TC)."""
    b128 = _round_up(max(int(batch), 1), 128)
    tb = min(target, _round_up(max(b128 // min_steps, 128), 128))
    return max(128, min(tb, b128))


def ncf_forward(data, params, feature_dims, embed_size,
                user_field_idx, item_field_idx, *, batch_tile=None):
    """data: int32 [B, F] raw per-field categorical indices."""
    B, F = data.shape
    E = embed_size
    FE = F * E
    H1 = params["w1"].shape[1]

    TB = batch_tile if batch_tile is not None else _pick_batch_tile(B)
    B_pad = _round_up(B, TB)

    # ---- Feature_Embedding glue: offset + row gather (data-dependent). ----
    # Pad on the cheap int32 side BEFORE the gather; padded rows read table
    # row 0 and get sliced off at the end.
    offsets = _field_offsets(feature_dims)
    idx = data.astype(jnp.int32) + offsets[None, :]          # [B, F]
    if B_pad != B:
        idx = jnp.pad(idx, ((0, B_pad - B), (0, 0)))
    # bf16 on the wire: halves HBM bytes of the dominant activation stream.
    table = params["emb_table"].astype(jnp.bfloat16)
    emb = jnp.take(table, idx, axis=0).reshape(B_pad, FE)    # [B_pad, FE] bf16
    # (Natural [B, FE] layout: no wrapper-side transpose pass through HBM.)

    # ---- Offline parameter prep (last MLP layer has no activation, dropout=0,
    # so layer 2 and the final fc fold into two weight rows + a scalar). ----
    w1 = params["w1"].astype(jnp.bfloat16)                   # [FE, H1]
    b1 = params["b1"].astype(jnp.float32)                    # [1, H1]
    w2f = (params["w2"] @ params["wfc_m"]).reshape(1, H1)    # [1, H1]
    wg = params["wfc_g"].reshape(1, E)                       # [1, E]
    b_fold = (params["b2"] @ params["wfc_m"]
              + params["bfc"]).reshape(1, 1)                 # [1, 1]

    kernel = functools.partial(
        ncf_kernel, embed_size=E,
        user_field_idx=user_field_idx, item_field_idx=item_field_idx)

    resident = lambda shape: pl.BlockSpec(shape, lambda i: (0, 0))

    cost = pl.CostEstimate(
        flops=2 * B_pad * FE * H1 + 4 * B_pad * (H1 + E),
        transcendentals=B_pad,
        bytes_accessed=B_pad * FE * 2 + B_pad * F * 4 + B_pad * 4
                       + FE * H1 * 2)

    out = pl.pallas_call(
        kernel,
        out_shape=jax.ShapeDtypeStruct((B_pad, 1), jnp.float32),
        grid_spec=pltpu.PrefetchScalarGridSpec(
            num_scalar_prefetch=0,
            grid=(B_pad // TB,),
            in_specs=[
                pl.BlockSpec((TB, FE), lambda i: (i, 0)),    # emb batch tile
                resident((FE, H1)),                          # W1 (VMEM resident)
                resident((1, H1)),                           # b1
                resident((1, H1)),                           # W2 @ wfc_m
                resident((1, E)),                            # wfc_g
                resident((1, 1)),                            # folded bias
            ],
            out_specs=pl.BlockSpec((TB, 1), lambda i: (i, 0)),
        ),
        compiler_params=pltpu.CompilerParams(
            dimension_semantics=("parallel",)),
        cost_estimate=cost,
    )(emb, w1, b1, w2f, wg, b_fold)

    return out[:B, 0]                                        # squeeze -> [B]


def init_params(key, feature_dims, embed_size, hidden_nbs):
    assert len(hidden_nbs) == 2, "this script fixes hidden_nbs to two layers"
    F = len(feature_dims)
    E = embed_size
    H1, H2 = hidden_nbs
    total_feats = int(sum(feature_dims))
    ks = jax.random.split(key, 8)
    return {
        "emb_table": jax.random.normal(ks[0], (total_feats, E), jnp.float32) * 0.1,
        "w1": jax.random.normal(ks[1], (F * E, H1), jnp.float32) * 0.1,
        "b1": jax.random.normal(ks[2], (1, H1), jnp.float32) * 0.1,
        "w2": jax.random.normal(ks[3], (H1, H2), jnp.float32) * 0.1,
        "b2": jax.random.normal(ks[4], (1, H2), jnp.float32) * 0.1,
        # fc over [gmf (E) | mlp (H2)] split into two blocks
        "wfc_g": jax.random.normal(ks[5], (E, 1), jnp.float32) * 0.1,
        "wfc_m": jax.random.normal(ks[6], (H2, 1), jnp.float32) * 0.1,
        "bfc": jax.random.normal(ks[7], (1, 1), jnp.float32) * 0.1,
    }


def reference_forward(data, params, feature_dims, embed_size,
                      user_field_idx, item_field_idx):
    """Pure-JAX f32 reference matching the PyTorch module semantics."""
    B, F = data.shape
    offsets = _field_offsets(feature_dims)
    embedded = jnp.take(params["emb_table"], data + offsets[None, :], axis=0)
    user_x = embedded[:, user_field_idx, :]
    item_x = embedded[:, item_field_idx, :]
    gmf = user_x * item_x
    flat = embedded.reshape(B, F * embed_size)
    h = jnp.maximum(flat @ params["w1"] + params["b1"], 0.0)
    h = h @ params["w2"] + params["b2"]
    cat = jnp.concatenate([gmf, h], axis=-1)
    wfc = jnp.concatenate([params["wfc_g"], params["wfc_m"]], axis=0)
    return jax.nn.sigmoid(cat @ wfc + params["bfc"])[:, 0]


if __name__ == "__main__":
    # Small NCF config.
    feature_dims = [10, 20, 15]     # 3 fields (user, item, extra)
    embed_size = 8
    hidden_nbs = [32, 16]
    user_field_idx = 0
    item_field_idx = 1
    B = 300                         # exercises padding + a multi-step grid

    key = jax.random.PRNGKey(0)
    pkey, dkey = jax.random.split(key)
    params = init_params(pkey, feature_dims, embed_size, hidden_nbs)

    # Deterministic integer field indices within each field's cardinality.
    maxes = jnp.asarray(feature_dims, dtype=jnp.int32)
    raw = jax.random.randint(dkey, (B, len(feature_dims)), 0, 1_000_000,
                             dtype=jnp.int32)
    data = raw % maxes[None, :]

    out = ncf_forward(data, params, feature_dims, embed_size,
                      user_field_idx, item_field_idx)
    out = jax.block_until_ready(out)

    ref = reference_forward(data, params, feature_dims, embed_size,
                            user_field_idx, item_field_idx)
    assert out.shape == (B,), out.shape
    # bf16 embedding/W1 on the wire -> relaxed tolerance vs. the f32 reference.
    assert jnp.allclose(out, ref, atol=1e-2, rtol=1e-2), (
        float(jnp.max(jnp.abs(out - ref))))

    print("KERNEL_OK")
</pallas_src>

<mosaic_0001>
module attributes {stable_mosaic.version = 11 : i64} {
  func.func @ncf_kernel(%arg0: i32, %arg1: memref<128x24xbf16, #tpu.memory_space<vmem>>, %arg2: memref<24x32xbf16, #tpu.memory_space<vmem>>, %arg3: memref<1x32xf32, #tpu.memory_space<vmem>>, %arg4: memref<1x32xf32, #tpu.memory_space<vmem>>, %arg5: memref<1x8xf32, #tpu.memory_space<vmem>>, %arg6: memref<1x1xf32, #tpu.memory_space<vmem>>, %arg7: memref<128x1xf32, #tpu.memory_space<vmem>>) attributes {dimension_semantics = [#tpu.dimension_semantics<parallel>], iteration_bounds = array<i64: 3>, scalar_prefetch = 0 : i64, scratch_operands = 0 : i64, tpu.core_type = #tpu.core_type<tc>, window_params = [{transform_indices = @transform_0, window_bounds = array<i64: 128, 24>}, {pipeline_mode = #tpu.pipeline_mode<synchronous>, transform_indices = @transform_1, window_bounds = array<i64: 24, 32>}, {pipeline_mode = #tpu.pipeline_mode<synchronous>, transform_indices = @transform_2, window_bounds = array<i64: 1, 32>}, {pipeline_mode = #tpu.pipeline_mode<synchronous>, transform_indices = @transform_3, window_bounds = array<i64: 1, 32>}, {pipeline_mode = #tpu.pipeline_mode<synchronous>, transform_indices = @transform_4, window_bounds = array<i64: 1, 8>}, {pipeline_mode = #tpu.pipeline_mode<synchronous>, transform_indices = @transform_5, window_bounds = array<i64: 1, 1>}, {transform_indices = @transform_6, window_bounds = array<i64: 128, 1>}]} {
    %c0 = arith.constant 0 : index
    %c0_0 = arith.constant 0 : index
    %0 = vector.load %arg1[%c0, %c0_0] : memref<128x24xbf16, #tpu.memory_space<vmem>>, vector<128x24xbf16>
    %c0_1 = arith.constant 0 : index
    %c0_2 = arith.constant 0 : index
    %1 = vector.load %arg2[%c0_1, %c0_2] : memref<24x32xbf16, #tpu.memory_space<vmem>>, vector<24x32xbf16>
    %cst = arith.constant dense<0.000000e+00> : vector<128x32xf32>
    %2 = tpu.matmul %0, %1, %cst {dimension_numbers = #tpu.dot_dimension_numbers<[1], [0], [0], [1], [0, 0, 1, 1], [], []>} : vector<128x24xbf16>, vector<24x32xbf16>, vector<128x32xf32> -> vector<128x32xf32>
    %c0_3 = arith.constant 0 : index
    %c0_4 = arith.constant 0 : index
    %3 = vector.load %arg3[%c0_3, %c0_4] : memref<1x32xf32, #tpu.memory_space<vmem>>, vector<1x32xf32>
    %4 = vector.broadcast %3 : vector<1x32xf32> to vector<128x32xf32>
    %5 = arith.addf %2, %4 : vector<128x32xf32>
    %cst_5 = arith.constant 0.000000e+00 : f32
    %6 = vector.broadcast %cst_5 : f32 to vector<128x32xf32>
    %7 = arith.maximumf %5, %6 : vector<128x32xf32>
    %8 = vector.extract_strided_slice %0 {offsets = [0, 0], sizes = [128, 8], strides = [1, 1]} : vector<128x24xbf16> to vector<128x8xbf16>
    %9 = arith.extf %8 : vector<128x8xbf16> to vector<128x8xf32>
    %10 = vector.extract_strided_slice %0 {offsets = [0, 8], sizes = [128, 8], strides = [1, 1]} : vector<128x24xbf16> to vector<128x8xbf16>
    %11 = arith.extf %10 : vector<128x8xbf16> to vector<128x8xf32>
    %12 = arith.mulf %9, %11 : vector<128x8xf32>
    %c0_6 = arith.constant 0 : index
    %c0_7 = arith.constant 0 : index
    %13 = vector.load %arg4[%c0_6, %c0_7] : memref<1x32xf32, #tpu.memory_space<vmem>>, vector<1x32xf32>
    %14 = vector.broadcast %13 : vector<1x32xf32> to vector<128x32xf32>
    %15 = arith.mulf %7, %14 : vector<128x32xf32>
    %cst_8 = arith.constant dense<0.000000e+00> : vector<128xf32>
    %16 = vector.multi_reduction <add>, %15, %cst_8 [1] : vector<128x32xf32> to vector<128xf32>
    %17 = vector.shape_cast %16 : vector<128xf32> to vector<128x1xf32>
    %c0_9 = arith.constant 0 : index
    %c0_10 = arith.constant 0 : index
    %18 = vector.load %arg5[%c0_9, %c0_10] : memref<1x8xf32, #tpu.memory_space<vmem>>, vector<1x8xf32>
    %19 = vector.broadcast %18 : vector<1x8xf32> to vector<128x8xf32>
    %20 = arith.mulf %12, %19 : vector<128x8xf32>
    %cst_11 = arith.constant dense<0.000000e+00> : vector<128xf32>
    %21 = vector.multi_reduction <add>, %20, %cst_11 [1] : vector<128x8xf32> to vector<128xf32>
    %22 = vector.shape_cast %21 : vector<128xf32> to vector<128x1xf32>
    %23 = arith.addf %17, %22 : vector<128x1xf32>
    %c0_12 = arith.constant 0 : index
    %c0_13 = arith.constant 0 : index
    %24 = vector.load %arg6[%c0_12, %c0_13] : memref<1x1xf32, #tpu.memory_space<vmem>>, vector<1x1xf32>
    %25 = vector.broadcast %24 : vector<1x1xf32> to vector<128x1xf32>
    %26 = arith.addf %23, %25 : vector<128x1xf32>
    %27 = arith.negf %26 : vector<128x1xf32>
    %28 = math.exp %27 : vector<128x1xf32>
    %cst_14 = arith.constant 1.000000e+00 : f32
    %29 = vector.broadcast %cst_14 : f32 to vector<128x1xf32>
    %30 = arith.addf %29, %28 : vector<128x1xf32>
    %31 = arith.divf %29, %30 : vector<128x1xf32>
    %c0_15 = arith.constant 0 : index
    %c0_16 = arith.constant 0 : index
    %32 = vector.load %arg7[%c0_15, %c0_16] : memref<128x1xf32, #tpu.memory_space<vmem>>, vector<128x1xf32>
    tpu.vector_store %arg7[%c0_15, %c0_16], %31 {strides = array<i32>} : memref<128x1xf32, #tpu.memory_space<vmem>>, vector<128x1xf32>,
    return
  }
  func.func @transform_0(%arg0: i32) -> (i32, i32) {
    %c0_i32 = arith.constant 0 : i32
    %c0_i32_0 = arith.constant 0 : i32
    return %arg0, %c0_i32 : i32, i32
  }
  func.func @transform_1(%arg0: i32) -> (i32, i32) {
    %c0_i32 = arith.constant 0 : i32
    %c0_i32_0 = arith.constant 0 : i32
    %c0_i32_1 = arith.constant 0 : i32
    return %c0_i32, %c0_i32_0 : i32, i32
  }
  func.func @transform_2(%arg0: i32) -> (i32, i32) {
    %c0_i32 = arith.constant 0 : i32
    %c0_i32_0 = arith.constant 0 : i32
    %c0_i32_1 = arith.constant 0 : i32
    return %c0_i32, %c0_i32_0 : i32, i32
  }
  func.func @transform_3(%arg0: i32) -> (i32, i32) {
    %c0_i32 = arith.constant 0 : i32
    %c0_i32_0 = arith.constant 0 : i32
    %c0_i32_1 = arith.constant 0 : i32
    return %c0_i32, %c0_i32_0 : i32, i32
  }
  func.func @transform_4(%arg0: i32) -> (i32, i32) {
    %c0_i32 = arith.constant 0 : i32
    %c0_i32_0 = arith.constant 0 : i32
    %c0_i32_1 = arith.constant 0 : i32
    return %c0_i32, %c0_i32_0 : i32, i32
  }
  func.func @transform_5(%arg0: i32) -> (i32, i32) {
    %c0_i32 = arith.constant 0 : i32
    %c0_i32_0 = arith.constant 0 : i32
    %c0_i32_1 = arith.constant 0 : i32
    return %c0_i32, %c0_i32_0 : i32, i32
  }
  func.func @transform_6(%arg0: i32) -> (i32, i32) {
    %c0_i32 = arith.constant 0 : i32
    %c0_i32_0 = arith.constant 0 : i32
    return %arg0, %c0_i32 : i32, i32
  }
}

</mosaic_0001>

<bundles_post_ra>
// kernel: tpu_custom_call.1
= control target key start
LH: loop header
LB: loop body
LE: loop exit
PB: predicated region body
PF: predicated region fallthrough
CT: control target
= control target key end

     0   :  { %s1186_s23 = smov 0   ;;  %s1451_s0 = inlined_call_operand.vmem [shape: bf16[384,24], index: 0, kind: input, shape index: {}]   ;;  %s1452_s1 = inlined_call_operand.vmem [shape: bf16[24,32], index: 1, kind: input, shape index: {}]   ;;  %s1453_s2 = inlined_call_operand.vmem [shape: f32[1,32], index: 2, kind: input, shape index: {}]   ;;  %s1454_s3 = inlined_call_operand.vmem [shape: f32[1,32], index: 3, kind: input, shape index: {}]   ;;  %s1455_s4 = inlined_call_operand.vmem [shape: f32[1,8], index: 4, kind: input, shape index: {}]   ;;  %s1456_s5 = inlined_call_operand.<no memory space> [shape: f32[1,1], index: 5, kind: input, shape index: {}]   ;;  %s1457_s6 = inlined_call_operand.vmem [shape: f32[384,1], index: 6, kind: output, shape index: {}]  }
   0x1   :  { %v11_v0 = vstv %s1456_s5 }
   0x2   :  { %12 = vst [vmem:[#allocation2] sm:$0x1] %v11_v0 }
   0x3 LB: > { %s923_s24 = sadd.s32 4294967295, %s1145_s23   ;;  %p927_p0 = scmp.ge.s32.totalorder %s1145_s23, 1  ;;  %s1145_s23 = sphi %s1186_s23, %s18_s23  }
   0x4   : > { %p215_p1 = scmp.lt.s32.totalorder %s1145_s23, 4 }
   0x6   : > { %p216_p2 = pnand %p927_p0, %p215_p1 }
   0x7   : > { %v1057_v1 = vld [vmem:[%s1452_s1] sm:$0xff] (!%p216_p2)   ;;  %v1058_v2 = vld [vmem:[%s1452_s1 + $0x8] ss:$0 sps:$4 sm:$0xff] (!%p216_p2)   ;;  %vm358_vm0 = vcmask (!%p216_p2), 1043456   ;;  %s928_s28 = sshll.u32 (!%p216_p2), %s923_s24, 4  ;;  %vm333_vm1 = vcmask (!%p216_p2), 195584  }
   0x8   : > { %219 = sbr.rel (%p216_p2) target bundleno = 451 (0x1c3), region = 44  ;;  %982 = vmatprep.subr.bf16.mxu0 (!%p216_p2), %v1057_v1  ;;  %1002 = vmatprep.subr.bf16.mxu1 (!%p216_p2), %v1057_v1  ;;  %p246_p3 = scmp.lt.s32.totalorder (!%p216_p2), %s928_s28, 47  ;;  %v360_v3 = vsel (!%p216_p2), %vm358_vm0, %v1058_v2, 0  ;;  %v1263_v42 = vld [vmem:[%s1455_s4] ss:$0 sm:$0xff] (!%p216_p2)  ;;  %vm666_vm2 = vcmask (!%p216_p2), 64512  }
   0x9   : > { %983 = vmatpush3.bf16.msra.mxu0 (!%p216_p2), %v1057_v1  ;;  %1004 = vmatpush3.bf16.msra.mxu1 (!%p216_p2), %v1057_v1  ;;  %s1147_s9 = smov (!%p216_p2), 120   ;;  %vm594_vm3 = vcmask (!%p216_p2), 261120   ;;  %vm850_vm4 = vcmask (!%p216_p2), 7168  }
   0xa   : > { %1006 = vmatprep.subr.msk.bf16.mxu0 (!%p216_p2), %vm358_vm0, %v1058_v2  ;;  %1007 = vmatprep.subr.msk.bf16.mxu1 (!%p216_p2), %vm358_vm0, %v1058_v2 }
   0xd   : > { %985 = vmatpush3.bf16.msra.mxu0 (!%p216_p2), %v360_v3  ;;  %1005 = vmatpush3.bf16.msra.mxu1 (!%p216_p2), %v360_v3 }
   0xf   : > { %s1459_s28 = smov (!%p246_p3, %s928_s28), 47 }
  0x10   : > { %s929_s29 = sshll.u32 %s1459_s28, 2  ;;  %s931_s16 = sshll.u32 %s1459_s28, 3 }
  0x11   : > { %s249_s8 = scalar_lea.vmem %s1451_s0, %s929_s29  ;;  %s1408_s19 = scalar_lea.vmem %s1457_s6, %s931_s16 }
  0x12   : > { %v258_v4 = vld [vmem:[%s249_s8] sm:$0xff]   ;;  %v1208_v6 = vld [vmem:[%s249_s8 + $0x8] sm:$0xff]   ;;  %v262_v8 = vld [vmem:[%s249_s8 + $0x10] sm:$0xff]  }
  0x13   : > { %v1206_v5 = vld [vmem:[%s249_s8 + $0x20] sm:$0xff]   ;;  %v1210_v7 = vld [vmem:[%s249_s8 + $0x28] sm:$0xff]   ;;  %v1212_v9 = vld [vmem:[%s249_s8 + $0x30] sm:$0xff]   ;;  %986 = vmatprep.mubr.msk.bf16.mxu0 %vm333_vm1, %v258_v4  ;;  %v475_v10 = vunpack.c.l.bf16 %v258_v4  ;;  %v476_v11 = vunpack.c.h.bf16 %v258_v4  ;;  %v477_v13 = vunpack.c.l.bf16 %v1208_v6  ;;  %v478_v14 = vunpack.c.h.bf16 %v1208_v6 }
  0x14   : > { %994 = vmatprep.mubr.msk.bf16.mxu1 %vm333_vm1, %v1206_v5  ;;  %987 = vmatmul.mubr.msk.bf16.vlgmr.msra.gmra.mrb[0].mxu0 %vm333_vm1, %v1208_v6  ;;  %v1221_v12 = vld [vmem:[%s249_s8 + $0x18] sm:$0xff]   ;;  %v479_v15 = vunpack.c.l.bf16 %v262_v8  ;;  %v480_v16 = vunpack.c.h.bf16 %v262_v8  ;;  %v483_v22 = vunpack.c.l.bf16 %v1206_v5  ;;  %v484_v23 = vunpack.c.h.bf16 %v1206_v5 }
  0x15   : > { %995 = vmatmul.mubr.msk.bf16.vlgmr.msra.gmra.mrb[0].mxu1 %vm333_vm1, %v1210_v7  ;;  %990 = vmatprep.mubr.msk.bf16.mxu0 %vm333_vm1, %v262_v8  ;;  %v1228_v17 = vld [vmem:[%s249_s8 + $0x38] sm:$0xff]   ;;  %v1017_v18 = vpack.i.bf16 %v476_v11, %v475_v10  ;;  %v481_v19 = vunpack.c.l.bf16 %v1221_v12  ;;  %v482_v20 = vunpack.c.h.bf16 %v1221_v12  ;;  %v1022_v24 = vpack.i.bf16 %v478_v14, %v477_v13 }
  0x16   : > { %998 = vmatprep.mubr.msk.bf16.mxu1 %vm333_vm1, %v1212_v9  ;;  %v1027_v21 = vpack.i.bf16 %v480_v16, %v479_v15  ;;  %v485_v26 = vunpack.c.l.bf16 %v1210_v7  ;;  %v486_v27 = vunpack.c.h.bf16 %v1210_v7  ;;  %v1037_v28 = vpack.i.bf16 %v484_v23, %v483_v22 }
  0x17   : > { %1018 = vrot.lane.b32.xlu0 %v1017_v18, %s1147_s9  ;;  %v1032_v25 = vpack.i.bf16 %v482_v20, %v481_v19  ;;  %v487_v29 = vunpack.c.l.bf16 %v1212_v9  ;;  %v488_v30 = vunpack.c.h.bf16 %v1212_v9  ;;  %v489_v32 = vunpack.c.l.bf16 %v1228_v17 }
  0x18   : > { %1028 = vrot.lane.b32.xlu1 %v1027_v21, %s1147_s9  ;;  %v1042_v31 = vpack.i.bf16 %v486_v27, %v485_v26  ;;  %v490_v33 = vunpack.c.h.bf16 %v1228_v17 }
  0x19   : > { %v1047_v34 = vpack.i.bf16 %v488_v30, %v487_v29 }
  0x1a   : > { %v1052_v35 = vpack.i.bf16 %v490_v33, %v489_v32 }
  0x1b   : > { %1023 = vrot.lane.b32.xlu0 %v1022_v24, %s1147_s9 }
  0x1c   : > { %991 = vmatmul.mubr.msk.bf16.gmra.mrb[4].mxu0 %vm333_vm1, %v1221_v12  ;;  %1033 = vrot.lane.b32.xlu1 %v1032_v25, %s1147_s9 }
  0x1d   : > { %999 = vmatmul.mubr.msk.bf16.gmra.mrb[4].mxu1 %vm333_vm1, %v1228_v17 }
  0x1f   : > { %1038 = vrot.lane.b32.xlu0 %v1037_v28, %s1147_s9 }
  0x20   : > { %1043 = vrot.lane.b32.xlu1 %v1042_v31, %s1147_s9 }
  0x23   : > { %1048 = vrot.lane.b32.xlu0 %v1047_v34, %s1147_s9 }
  0x24   : > { %1053 = vrot.lane.b32.xlu1 %v1052_v35, %s1147_s9 }
  0x89   : > { %v1019_v36 = vpop.permute.xlu0 %1018 }
  0x8a   : > { %v1021_v37 = vunpack.i.h.bf16 %v1019_v36  ;;  %v1020_v38 = vunpack.i.l.bf16 %v1019_v36  ;;  %v1029_v39 = vpop.permute.xlu1 %1028 }
  0x8b   : > { %v1031_v40 = vunpack.i.h.bf16 %v1029_v39  ;;  %v1030_v41 = vunpack.i.l.bf16 %v1029_v39 }
  0x8c   : > { %v556_v43 = vmul.f32 %v1021_v37, %v476_v11  ;;  %v555_v44 = vmul.f32 %v1020_v38, %v475_v10 }
  0x8d   : > { %v1024_v45 = vpop.permute.xlu0 %1023  ;;  %v560_v46 = vmul.f32 %v1031_v40, %v480_v16  ;;  %v559_v47 = vmul.f32 %v1030_v41, %v479_v15 }
  0x8e   : > { %v1026_v48 = vunpack.i.h.bf16 %v1024_v45  ;;  %v1025_v49 = vunpack.i.l.bf16 %v1024_v45  ;;  %v651_v50 = vmul.f32 %v1263_v42, %v556_v43  ;;  %v650_v51 = vmul.f32 %v1263_v42, %v555_v44  ;;  %v1034_v52 = vpop.permute.xlu1 %1033 }
  0x8f   : > { %v1036_v57 = vunpack.i.h.bf16 %v1034_v52  ;;  %v1035_v58 = vunpack.i.l.bf16 %v1034_v52  ;;  %v655_v60 = vmul.f32 %v1263_v42, %v560_v46  ;;  %v654_v61 = vmul.f32 %v1263_v42, %v559_v47  ;;  %v1320_v46 = vld [vmem:[%s1453_s2] ss:$0 sm:$0xff] }
  0x90   : > { %v558_v53 = vmul.f32 %v1026_v48, %v478_v14  ;;  %v557_v54 = vmul.f32 %v1025_v49, %v477_v13  ;;  %v670_v55 = vsel %vm666_vm2, %v651_v50, 0.0  ;;  %v667_v56 = vsel %vm666_vm2, %v650_v51, 0.0 }
  0x91   : > { %671 = vadd.xlane.f32.xlu0 %v670_v55  ;;  %668 = vadd.xlane.f32.xlu1 %v667_v56  ;;  %v1039_v59 = vpop.permute.xlu0 %1038  ;;  %v562_v2 = vmul.f32 %v1036_v57, %v482_v20  ;;  %v561_v3 = vmul.f32 %v1035_v58, %v481_v19  ;;  %v682_v12 = vsel %vm666_vm2, %v655_v60, 0.0  ;;  %v679_v13 = vsel %vm666_vm2, %v654_v61, 0.0  ;;  %v1329_v56 = vld [vmem:[%s1454_s3] ss:$0 sm:$0xff] }
  0x92   : > { %v653_v62 = vmul.f32 %v1263_v42, %v558_v53  ;;  %v652_v63 = vmul.f32 %v1263_v42, %v557_v54  ;;  %v1041_v0 = vunpack.i.h.bf16 %v1039_v59  ;;  %v1040_v1 = vunpack.i.l.bf16 %v1039_v59  ;;  %v1044_v4 = vpop.permute.xlu1 %1043 }
  0x93   : > { %v1046_v15 = vunpack.i.h.bf16 %v1044_v4  ;;  %v1045_v16 = vunpack.i.l.bf16 %v1044_v4  ;;  %v657_v18 = vmul.f32 %v1263_v42, %v562_v2  ;;  %v656_v19 = vmul.f32 %v1263_v42, %v561_v3 }
  0x94   : > { %v676_v6 = vsel %vm666_vm2, %v653_v62, 0.0  ;;  %v673_v8 = vsel %vm666_vm2, %v652_v63, 0.0  ;;  %v564_v10 = vmul.f32 %v1041_v0, %v484_v23  ;;  %v563_v11 = vmul.f32 %v1040_v1, %v483_v22 }
  0x95   : > { %677 = vadd.xlane.f32.xlu0 %v676_v6  ;;  %674 = vadd.xlane.f32.xlu1 %v673_v8  ;;  %v1049_v14 = vpop.permute.xlu0 %1048  ;;  %v566_v28 = vmul.f32 %v1046_v15, %v486_v27  ;;  %v565_v31 = vmul.f32 %v1045_v16, %v485_v26  ;;  %v688_v34 = vsel %vm666_vm2, %v657_v18, 0.0  ;;  %v685_v35 = vsel %vm666_vm2, %v656_v19, 0.0 }
  0x96   : > { %v1054_v20 = vpop.permute.xlu1 %1053  ;;  %v1051_v21 = vunpack.i.h.bf16 %v1049_v14  ;;  %v1050_v24 = vunpack.i.l.bf16 %v1049_v14  ;;  %v659_v23 = vmul.f32 %v1263_v42, %v564_v10  ;;  %v658_v5 = vmul.f32 %v1263_v42, %v563_v11 }
  0x97   : > { %v1056_v22 = vunpack.i.h.bf16 %v1054_v20  ;;  %v1055_v25 = vunpack.i.l.bf16 %v1054_v20  ;;  %v660_v17 = vmul.f32 %v1263_v42, %v565_v31 }
  0x98   : > { %v568_v38 = vmul.f32 %v1051_v21, %v488_v30  ;;  %v567_v27 = vmul.f32 %v1050_v24, %v487_v29  ;;  %v694_v39 = vsel %vm666_vm2, %v659_v23, 0.0  ;;  %v691_v40 = vsel %vm666_vm2, %v658_v5, 0.0 }
  0x99   : > { %683 = vadd.xlane.f32.xlu0 %v682_v12  ;;  %680 = vadd.xlane.f32.xlu1 %v679_v13  ;;  %v570_v36 = vmul.f32 %v1056_v22, %v490_v33  ;;  %v569_v37 = vmul.f32 %v1055_v25, %v489_v32  ;;  %v661_v33 = vmul.f32 %v1263_v42, %v566_v28  ;;  %v697_v29 = vsel %vm666_vm2, %v660_v17, 0.0 }
  0x9a   : > { %v663_v41 = vmul.f32 %v1263_v42, %v568_v38  ;;  %v662_v43 = vmul.f32 %v1263_v42, %v567_v27 }
  0x9b   : > { %v664_v7 = vmul.f32 %v1263_v42, %v569_v37  ;;  %v665_v26 = vmul.f32 %v1263_v42, %v570_v36  ;;  %v700_v9 = vsel %vm666_vm2, %v661_v33, 0.0 }
  0x9c   : > { %v706_v44 = vsel %vm666_vm2, %v663_v41, 0.0  ;;  %v703_v45 = vsel %vm666_vm2, %v662_v43, 0.0 }
  0x9d   : > { %689 = vadd.xlane.f32.xlu0 %v688_v34  ;;  %686 = vadd.xlane.f32.xlu1 %v685_v35  ;;  %v1306_v32 = vsel %vm666_vm2, %v664_v7, 0.0  ;;  %v1309_v30 = vsel %vm666_vm2, %v665_v26, 0.0 }
  0xa1   : > { %695 = vadd.xlane.f32.xlu0 %v694_v39  ;;  %692 = vadd.xlane.f32.xlu1 %v691_v40 }
  0xa5   : > { %701 = vadd.xlane.f32.xlu0 %v700_v9  ;;  %698 = vadd.xlane.f32.xlu1 %v697_v29 }
  0xa9   : > { %707 = vadd.xlane.f32.xlu0 %v706_v44  ;;  %704 = vadd.xlane.f32.xlu1 %v703_v45 }
  0xe7   : > { %v988_v48 = vpop.f32.mrb[0].mxu0 }
  0xe8   : > { %v996_v47 = vpop.f32.mrb[0].mxu1  ;;  %v405_v50 = vadd.f32 %v988_v48, %v1320_v46  ;;  %v396_v42 = vpop.f32.mrb[1].mxu0 }
  0xe9   : > { %v437_v49 = vadd.f32 %v996_v47, %v1320_v46  ;;  %v428_v51 = vpop.f32.mrb[1].mxu1  ;;  %v397_v52 = vadd.f32 %v1320_v46, %v396_v42  ;;  %v989_v53 = vpop.f32.mrb[2].mxu0 }
  0xea   : > { %v429_v54 = vadd.f32 %v1320_v46, %v428_v51  ;;  %v997_v55 = vpop.f32.mrb[2].mxu1  ;;  %v461_v58 = vmax.f32 %v405_v50, 0.0  ;;  %v408_v59 = vadd.f32 %v989_v53, %v1320_v46  ;;  %v399_v60 = vpop.f32.mrb[3].mxu0 }
  0xeb   : > { %v469_v57 = vmax.f32 %v437_v49, 0.0  ;;  %v431_v61 = vpop.f32.mrb[3].mxu1  ;;  %v459_v62 = vmax.f32 %v397_v52, 0.0  ;;  %v400_v63 = vadd.f32 %v1320_v46, %v399_v60  ;;  %v440_v4 = vadd.f32 %v997_v55, %v1320_v46 }
  0xec   : > { %v467_v0 = vmax.f32 %v429_v54, 0.0  ;;  %v580_v2 = vmul.f32 %v1329_v56, %v461_v58  ;;  %v462_v3 = vmax.f32 %v408_v59, 0.0  ;;  %v432_v24 = vadd.f32 %v1320_v46, %v431_v61 }
  0xed   : > { %v588_v1 = vmul.f32 %v1329_v56, %v469_v57  ;;  %v460_v8 = vmax.f32 %v400_v63, 0.0  ;;  %v578_v12 = vmul.f32 %v1329_v56, %v459_v62  ;;  %v470_v21 = vmax.f32 %v440_v4, 0.0 }
  0xee   : > { %v586_v6 = vmul.f32 %v1329_v56, %v467_v0  ;;  %v601_v11 = vsel %vm594_vm3, %v580_v2, 0.0  ;;  %v581_v31 = vmul.f32 %v1329_v56, %v462_v3  ;;  %v468_v38 = vmax.f32 %v432_v24, 0.0 }
  0xef   : > { %v625_v10 = vsel %vm594_vm3, %v588_v1, 0.0  ;;  %602 = vadd.xlane.f32.xlu0 %v601_v11  ;;  %v992_v13 = vpop.f32.mrb[4].mxu0  ;;  %v595_v25 = vsel %vm594_vm3, %v578_v12, 0.0  ;;  %v579_v28 = vmul.f32 %v1329_v56, %v460_v8  ;;  %v589_v27 = vmul.f32 %v1329_v56, %v470_v21 }
  0xf0   : > { %626 = vadd.xlane.f32.xlu1 %v625_v10  ;;  %v1000_v14 = vpop.f32.mrb[4].mxu1  ;;  %v619_v15 = vsel %vm594_vm3, %v586_v6, 0.0  ;;  %v421_v16 = vadd.f32 %v992_v13, %v1320_v46  ;;  %v412_v18 = vpop.f32.mrb[5].mxu0  ;;  %v604_v39 = vsel %vm594_vm3, %v581_v31, 0.0  ;;  %v587_v29 = vmul.f32 %v1329_v56, %v468_v38 }
  0xf1   : > { %v453_v19 = vadd.f32 %v1000_v14, %v1320_v46  ;;  %v444_v20 = vpop.f32.mrb[5].mxu1  ;;  %v993_v23 = vpop.f32.mrb[6].mxu0  ;;  %v413_v7 = vadd.f32 %v1320_v46, %v412_v18  ;;  %v598_v26 = vsel %vm594_vm3, %v579_v28, 0.0  ;;  %v628_v9 = vsel %vm594_vm3, %v589_v27, 0.0 }
  0xf2   : > { %v1001_v5 = vpop.f32.mrb[6].mxu1  ;;  %v465_v22 = vmax.f32 %v421_v16, 0.0  ;;  %v415_v34 = vpop.f32.mrb[7].mxu0  ;;  %v424_v40 = vadd.f32 %v993_v23, %v1320_v46  ;;  %v445_v44 = vadd.f32 %v1320_v46, %v444_v20  ;;  %v622_v49 = vsel %vm594_vm3, %v587_v29, 0.0 }
  0xf3   : > { %v447_v35 = vpop.f32.mrb[7].mxu1  ;;  %596 = vadd.xlane.f32.xlu0 %v595_v25  ;;  %v473_v36 = vmax.f32 %v453_v19, 0.0  ;;  %v463_v41 = vmax.f32 %v413_v7, 0.0  ;;  %v456_v45 = vadd.f32 %v1001_v5, %v1320_v46  ;;  %v416_v48 = vadd.f32 %v1320_v46, %v415_v34 }
  0xf4   : > { %620 = vadd.xlane.f32.xlu1 %v619_v15  ;;  %v584_v37 = vmul.f32 %v1329_v56, %v465_v22  ;;  %v466_v43 = vmax.f32 %v424_v40, 0.0  ;;  %v471_v50 = vmax.f32 %v445_v44, 0.0  ;;  %v448_v54 = vadd.f32 %v1320_v46, %v447_v35 }
  0xf5   : > { %v592_v17 = vmul.f32 %v1329_v56, %v473_v36  ;;  %v474_v42 = vmax.f32 %v456_v45, 0.0  ;;  %v582_v51 = vmul.f32 %v1329_v56, %v463_v41  ;;  %v464_v53 = vmax.f32 %v416_v48, 0.0 }
  0xf6   : > { %v613_v33 = vsel %vm594_vm3, %v584_v37, 0.0  ;;  %v585_v52 = vmul.f32 %v1329_v56, %v466_v43  ;;  %v590_v58 = vmul.f32 %v1329_v56, %v471_v50  ;;  %v472_v60 = vmax.f32 %v448_v54, 0.0 }
  0xf7   : > { %605 = vadd.xlane.f32.xlu0 %v604_v39  ;;  %v637_v47 = vsel %vm594_vm3, %v592_v17, 0.0  ;;  %v607_v55 = vsel %vm594_vm3, %v582_v51, 0.0  ;;  %v593_v59 = vmul.f32 %v1329_v56, %v474_v42  ;;  %v583_v63 = vmul.f32 %v1329_v56, %v464_v53 }
  0xf8   : > { %599 = vadd.xlane.f32.xlu1 %v598_v26  ;;  %v616_v57 = vsel %vm594_vm3, %v585_v52, 0.0  ;;  %v631_v61 = vsel %vm594_vm3, %v590_v58, 0.0  ;;  %v591_v0 = vmul.f32 %v1329_v56, %v472_v60 }
  0xf9   : > { %v640_v62 = vsel %vm594_vm3, %v593_v59, 0.0  ;;  %v610_v46 = vsel %vm594_vm3, %v583_v63, 0.0 }
  0xfa   : > { %v634_v1 = vsel %vm594_vm3, %v591_v0, 0.0 }
  0xfb   : > { %629 = vadd.xlane.f32.xlu0 %v628_v9 }
  0xfc   : > { %614 = vadd.xlane.f32.xlu1 %v613_v33 }
  0xff   : > { %623 = vadd.xlane.f32.xlu0 %v622_v49 }
 0x100   : > { %638 = vadd.xlane.f32.xlu1 %v637_v47 }
 0x103   : > { %617 = vadd.xlane.f32.xlu0 %v616_v57 }
 0x104   : > { %608 = vadd.xlane.f32.xlu1 %v607_v55 }
 0x107   : > { %641 = vadd.xlane.f32.xlu0 %v640_v62 }
 0x108   : > { %632 = vadd.xlane.f32.xlu1 %v631_v61 }
 0x10b   : > { %611 = vadd.xlane.f32.xlu0 %v610_v46 }
 0x10c   : > { %710 = vadd.xlane.f32.xlu1 %v1306_v32 }
 0x10f   : > { %635 = vadd.xlane.f32.xlu0 %v634_v1 }
 0x113   : > { %713 = vadd.xlane.f32.xlu0 %v1309_v30  ;;  %v1387_v30 = vld [vmem:[#allocation2] ss:$0 sm:$0xff] }
 0x11e   : > { %v672_v2 = vpop.xlane.xlu0 %671  ;;  %v669_v3 = vpop.xlane.xlu1 %668 }
 0x122   : > { %v678_v4 = vpop.xlane.xlu0 %677  ;;  %v675_v6 = vpop.xlane.xlu1 %674 }
 0x126   : > { %v1377_v8 = vpop.xlane.xlu0 %683  ;;  %v1379_v10 = vpop.xlane.xlu1 %680 }
 0x12a   : > { %v1381_v11 = vpop.xlane.xlu0 %689  ;;  %v687_v12 = vpop.xlane.xlu1 %686 }
 0x12e   : > { %v696_v56 = vpop.xlane.xlu0 %695  ;;  %v693_v13 = vpop.xlane.xlu1 %692 }
 0x132   : > { %v702_v32 = vpop.xlane.xlu0 %701  ;;  %v699_v14 = vpop.xlane.xlu1 %698 }
 0x136   : > { %v1383_v15 = vpop.xlane.xlu0 %707  ;;  %v1385_v16 = vpop.xlane.xlu1 %704 }
 0x17c   : > { %v603_v19 = vpop.xlane.xlu0 %602 }
 0x17d   : > { %v627_v18 = vpop.xlane.xlu1 %626  ;;  %v717_v21 = vadd.f32 %v675_v6, %v603_v19 }
 0x17e   : > { %v725_v20 = vadd.f32 %v699_v14, %v627_v18 }
 0x17f   : > { %v740_v23 = vadd.f32 %v1387_v30, %v717_v21 }
 0x180   : > { %v748_v24 = vadd.f32 %v1387_v30, %v725_v20  ;;  %v597_v22 = vpop.xlane.xlu0 %596 }
 0x181   : > { %v621_v5 = vpop.xlane.xlu1 %620  ;;  %v956_v28 = vmul.f32 -1.442695, %v740_v23  ;;  %v715_v34 = vadd.f32 %v669_v3, %v597_v22 }
 0x182   : > { %v964_v25 = vmul.f32 -1.442695, %v748_v24  ;;  %v723_v31 = vadd.f32 %v693_v13, %v621_v5 }
 0x183   : > { %v738_v36 = vadd.f32 %v1387_v30, %v715_v34 }
 0x184   : > { %1075 = vpow2.f32 %v964_v25  ;;  %v746_v35 = vadd.f32 %v1387_v30, %v723_v31  ;;  %v606_v38 = vpop.xlane.xlu0 %605 }
 0x185   : > { %1077 = vpow2.f32 %v956_v28  ;;  %v600_v37 = vpop.xlane.xlu1 %599  ;;  %v954_v7 = vmul.f32 -1.442695, %v738_v36  ;;  %v718_v39 = vadd.f32 %v678_v4, %v606_v38 }
 0x186   : > { %v962_v27 = vmul.f32 -1.442695, %v746_v35  ;;  %v716_v26 = vadd.f32 %v672_v2, %v600_v37 }
 0x187   : > { %v741_v33 = vadd.f32 %v1387_v30, %v718_v39 }
 0x188   : > { %1079 = vpow2.f32 %v962_v27  ;;  %v739_v40 = vadd.f32 %v1387_v30, %v716_v26  ;;  %v630_v9 = vpop.xlane.xlu0 %629 }
 0x189   : > { %1081 = vpow2.f32 %v954_v7  ;;  %v615_v17 = vpop.xlane.xlu1 %614  ;;  %v957_v41 = vmul.f32 -1.442695, %v741_v33  ;;  %v726_v44 = vadd.f32 %v702_v32, %v630_v9 }
 0x18a   : > { %v955_v29 = vmul.f32 -1.442695, %v739_v40  ;;  %v721_v43 = vadd.f32 %v687_v12, %v615_v17 }
 0x18b   : > { %v749_v47 = vadd.f32 %v1387_v30, %v726_v44 }
 0x18c   : > { %1083 = vpow2.f32 %v955_v29  ;;  %v744_v45 = vadd.f32 %v1387_v30, %v721_v43  ;;  %v624_v49 = vpop.xlane.xlu0 %623 }
 0x18d   : > { %1085 = vpow2.f32 %v957_v41  ;;  %v639_v48 = vpop.xlane.xlu1 %638  ;;  %v724_v51 = vadd.f32 %v696_v56, %v624_v49  ;;  %v965_v54 = vmul.f32 -1.442695, %v749_v47 }
 0x18e   : > { %v1076_v50 = vpop.eup %1075  ;;  %v960_v42 = vmul.f32 -1.442695, %v744_v45 }
 0x18f   : > { %v1078_v52 = vpop.eup %1077  ;;  %v812_v53 = vadd.f32 1.0, %v1076_v50  ;;  %v747_v57 = vadd.f32 %v1387_v30, %v724_v51 }
 0x190   : > { %v804_v55 = vadd.f32 1.0, %v1078_v52  ;;  %1087 = vpow2.f32 %v960_v42  ;;  %v618_v59 = vpop.xlane.xlu0 %617 }
 0x191   : > { %1089 = vrcp.f32 %v812_v53  ;;  %v609_v58 = vpop.xlane.xlu1 %608  ;;  %v963_v61 = vmul.f32 -1.442695, %v747_v57  ;;  %v722_v63 = vadd.f32 %v1381_v11, %v618_v59 }
 0x192   : > { %v1080_v60 = vpop.eup %1079  ;;  %1091 = vrcp.f32 %v804_v55  ;;  %v719_v62 = vadd.f32 %v1379_v10, %v609_v58 }
 0x193   : > { %v1082_v46 = vpop.eup %1081  ;;  %v810_v0 = vadd.f32 1.0, %v1080_v60  ;;  %1093 = vpow2.f32 %v965_v54  ;;  %v745_v3 = vadd.f32 %v1387_v30, %v722_v63 }
 0x194   : > { %v802_v1 = vadd.f32 1.0, %v1082_v46  ;;  %1095 = vpow2.f32 %v963_v61  ;;  %v742_v2 = vadd.f32 %v1387_v30, %v719_v62  ;;  %v642_v6 = vpop.xlane.xlu0 %641 }
 0x195   : > { %1097 = vrcp.f32 %v810_v0  ;;  %v633_v4 = vpop.xlane.xlu1 %632  ;;  %v961_v32 = vmul.f32 -1.442695, %v745_v3 }
 0x196   : > { %v1084_v12 = vpop.eup %1083  ;;  %1099 = vrcp.f32 %v802_v1  ;;  %v958_v56 = vmul.f32 -1.442695, %v742_v2  ;;  %v727_v10 = vadd.f32 %v1385_v16, %v633_v4 }
 0x197   : > { %v1086_v13 = vpop.eup %1085  ;;  %v803_v11 = vadd.f32 1.0, %v1084_v12 }
 0x198   : > { %v805_v14 = vadd.f32 1.0, %v1086_v13  ;;  %1101 = vpow2.f32 %v958_v56  ;;  %v750_v18 = vadd.f32 %v1387_v30, %v727_v10  ;;  %v612_v20 = vpop.xlane.xlu0 %611 }
 0x199   : > { %1103 = vrcp.f32 %v803_v11  ;;  %v711_v19 = vpop.xlane.xlu1 %710  ;;  %v720_v23 = vadd.f32 %v1377_v8, %v612_v20 }
 0x19a   : > { %v1088_v21 = vpop.eup %1087  ;;  %1105 = vrcp.f32 %v805_v14  ;;  %v966_v16 = vmul.f32 -1.442695, %v750_v18  ;;  %v729_v24 = vadd.f32 %v711_v19, %v639_v48 }
 0x19b   : > { %v1090_v5 = vpop.eup %1089  ;;  %v808_v22 = vadd.f32 1.0, %v1088_v21  ;;  %1107 = vpow2.f32 %v961_v32  ;;  %v743_v31 = vadd.f32 %v1387_v30, %v720_v23 }
 0x19c   : > { %v1092_v25 = vpop.eup %1091  ;;  %861 = vst.msk [vmem:[%s1408_s19 + $0x50] sm:$0xff] %vm850_vm4, %v1090_v5  ;;  %1109 = vpow2.f32 %v966_v16  ;;  %v752_v28 = vadd.f32 %v1387_v30, %v729_v24  ;;  %v636_v35 = vpop.xlane.xlu0 %635 }
 0x19d   : > { %v1094_v34 = vpop.eup %1093  ;;  %853 = vst.msk [vmem:[%s1408_s19 + $0x10] sm:$0xff] %vm850_vm4, %v1092_v25  ;;  %1111 = vrcp.f32 %v808_v22  ;;  %v728_v38 = vadd.f32 %v1383_v15, %v636_v35  ;;  %v959_v26 = vmul.f32 -1.442695, %v743_v31 }
 0x19e   : > { %v1096_v36 = vpop.eup %1095  ;;  %v813_v8 = vadd.f32 1.0, %v1094_v34  ;;  %v968_v37 = vmul.f32 -1.442695, %v752_v28 }
 0x19f   : > { %v1098_v27 = vpop.eup %1097  ;;  %v811_v7 = vadd.f32 1.0, %v1096_v36  ;;  %v751_v40 = vadd.f32 %v1387_v30, %v728_v38 }
 0x1a0   : > { %v1100_v39 = vpop.eup %1099  ;;  %859 = vst.msk [vmem:[%s1408_s19 + $0x40] sm:$0xff] %vm850_vm4, %v1098_v27  ;;  %1113 = vrcp.f32 %v813_v8  ;;  %v714_v33 = vpop.xlane.xlu0 %713 }
 0x1a1   : > { %851 = vst.msk [vmem:[%s1408_s19] sm:$0xff] %vm850_vm4, %v1100_v39  ;;  %1115 = vrcp.f32 %v811_v7  ;;  %v967_v9 = vmul.f32 -1.442695, %v751_v40  ;;  %v730_v29 = vadd.f32 %v714_v33, %v642_v6 }
 0x1a2   : > { %v1102_v17 = vpop.eup %1101  ;;  %1117 = vpow2.f32 %v968_v37 }
 0x1a3   : > { %v1104_v15 = vpop.eup %1103  ;;  %v806_v41 = vadd.f32 1.0, %v1102_v17  ;;  %1119 = vpow2.f32 %v959_v26  ;;  %v753_v44 = vadd.f32 %v1387_v30, %v730_v29 }
 0x1a4   : > { %v1106_v43 = vpop.eup %1105  ;;  %852 = vst.msk [vmem:[%s1408_s19 + $0x8] sm:$0xff] %vm850_vm4, %v1104_v15  ;;  %1121 = vpow2.f32 %v967_v9 }
 0x1a5   : > { %v1108_v45 = vpop.eup %1107  ;;  %854 = vst.msk [vmem:[%s1408_s19 + $0x18] sm:$0xff] %vm850_vm4, %v1106_v43  ;;  %1123 = vrcp.f32 %v806_v41  ;;  %v969_v49 = vmul.f32 -1.442695, %v753_v44 }
 0x1a6   : > { %v1110_v47 = vpop.eup %1109  ;;  %v809_v48 = vadd.f32 1.0, %v1108_v45 }
 0x1a7   : > { %v1112_v50 = vpop.eup %1111  ;;  %v814_v42 = vadd.f32 1.0, %v1110_v47 }
 0x1a8   : > { %857 = vst.msk [vmem:[%s1408_s19 + $0x30] sm:$0xff] %vm850_vm4, %v1112_v50  ;;  %1125 = vrcp.f32 %v809_v48 }
 0x1a9   : > { %1127 = vrcp.f32 %v814_v42 }
 0x1aa   : > { %v1114_v51 = vpop.eup %1113  ;;  %1129 = vpow2.f32 %v969_v49 }
 0x1ab   : > { %v1116_v52 = vpop.eup %1115  ;;  %862 = vst.msk [vmem:[%s1408_s19 + $0x58] sm:$0xff] %vm850_vm4, %v1114_v51 }
 0x1ac   : > { %v1118_v30 = vpop.eup %1117  ;;  %860 = vst.msk [vmem:[%s1408_s19 + $0x48] sm:$0xff] %vm850_vm4, %v1116_v52 }
 0x1ad   : > { %v1120_v53 = vpop.eup %1119  ;;  %v816_v54 = vadd.f32 1.0, %v1118_v30 }
 0x1ae   : > { %v1122_v55 = vpop.eup %1121  ;;  %v807_v57 = vadd.f32 1.0, %v1120_v53 }
 0x1af   : > { %v1124_v58 = vpop.eup %1123  ;;  %1131 = vrcp.f32 %v816_v54  ;;  %v815_v59 = vadd.f32 1.0, %v1122_v55 }
 0x1b0   : > { %855 = vst.msk [vmem:[%s1408_s19 + $0x20] sm:$0xff] %vm850_vm4, %v1124_v58  ;;  %1133 = vrcp.f32 %v807_v57 }
 0x1b1   : > { %1135 = vrcp.f32 %v815_v59 }
 0x1b2   : > { %v1126_v60 = vpop.eup %1125 }
 0x1b3   : > { %v1128_v61 = vpop.eup %1127  ;;  %858 = vst.msk [vmem:[%s1408_s19 + $0x38] sm:$0xff] %vm850_vm4, %v1126_v60 }
 0x1b4   : > { %v1130_v62 = vpop.eup %1129  ;;  %863 = vst.msk [vmem:[%s1408_s19 + $0x60] sm:$0xff] %vm850_vm4, %v1128_v61 }
 0x1b5   : > { %v817_v63 = vadd.f32 1.0, %v1130_v62 }
 0x1b7   : > { %1137 = vrcp.f32 %v817_v63 }
 0x1b9   : > { %v1132_v46 = vpop.eup %1131 }
 0x1ba   : > { %v1134_v0 = vpop.eup %1133  ;;  %865 = vst.msk [vmem:[%s1408_s19 + $0x70] sm:$0xff] %vm850_vm4, %v1132_v46 }
 0x1bb   : > { %v1136_v1 = vpop.eup %1135  ;;  %856 = vst.msk [vmem:[%s1408_s19 + $0x28] sm:$0xff] %vm850_vm4, %v1134_v0 }
 0x1bc   : > { %864 = vst.msk [vmem:[%s1408_s19 + $0x68] sm:$0xff] %vm850_vm4, %v1136_v1 }
 0x1c1   : > { %v1138_v2 = vpop.eup %1137 }
 0x1c2   : > { %866 = vst.msk [vmem:[%s1408_s19 + $0x78] sm:$0xff] %vm850_vm4, %v1138_v2 }
 0x1c3 PF: > { %s18_s23 = sadd.s32 1, %s1145_s23  }
 0x1c4   : > { %p15_p4 = scmp.ge.s32.totalorder %s18_s23, 5  }
 0x1c6   :  { %17 = sbr.rel (!%p15_p4) target bundleno = 3 (0x3), region = 74 }

</bundles_post_ra>
